<compile_context>
chip_gen: v7x
topology: tpu7x:2x2x1
jax: 0.10.0
libtpu: 0.0.40
codegen_flags: <defaults>
</compile_context>

<pallas_src>
import jax
import jax.numpy as jnp
from jax import lax
from jax.experimental import pallas as pl
from jax.experimental.pallas import tpu as pltpu


def make_mlp_kernel(num_hidden_layers: int, sub_tb: int, num_chunks: int):
    """ReLU MLP with a single linear output unit, batch on lanes.

    refs = (obs, w0, b0, ..., w_{H-1}, b_{H-1}, w_last, b_last_smem, out)
      obs    : (tb, obs_dim)      native layout, batch on sublanes in HBM/VMEM
      w_j    : (out_j, in_j)      PyTorch-native layout
      b_j    : (out_j, 1)
      w_last : (hidden_last, 1)   column (H >= 1)  |  (1, obs_dim) row (H == 0)
      b_last : (1,) f32 in SMEM
      out    : (1, tb)            lane-dense value slab
    """
    H = num_hidden_layers
    nt_dims = (((1,), (1,)), ((), ()))  # contract the feature axis of both operands

    def kernel(*refs):
        obs_ref = refs[0]
        out_ref = refs[-1]
        param_refs = refs[1:-1]

        # Tiny parameters: load once per grid step, reused for every sub-chunk.
        ws = [param_refs[2 * j][...] for j in range(H)]
        bs = [param_refs[2 * j + 1][...] for j in range(H)]
        w_last = param_refs[2 * H][...]
        b_last = param_refs[2 * H + 1][0]          # f32 scalar from SMEM

        def chunk(c, carry):
            start = c * sub_tb
            if num_chunks > 1 and sub_tb % 128 == 0:
                start = pl.multiple_of(start, 128)
            # (sub_tb, obs_dim); upcast (no-op for f32 inputs, VPU cast for bf16).
            x = obs_ref[pl.ds(start, sub_tb), :].astype(jnp.float32)
            if H == 0:
                # Single Linear: (1, obs_dim) @ (sub, obs_dim)^T -> (1, sub)
                v = lax.dot_general(w_last, x, nt_dims,
                                    preferred_element_type=jnp.float32) + b_last
            else:
                # First layer absorbs the obs transpose on the MXU -> (h0, sub).
                h = lax.dot_general(ws[0], x, nt_dims,
                                    preferred_element_type=jnp.float32) + bs[0]
                h = jnp.maximum(h, 0.0)
                for j in range(1, H):
                    h = jnp.dot(ws[j], h, preferred_element_type=jnp.float32) + bs[j]
                    h = jnp.maximum(h, 0.0)
                # out_features == 1: VPU multiply + sublane (XLU) reduce instead
                # of an M=1 MXU matmul.
                v = jnp.sum(h * w_last, axis=0, keepdims=True) + b_last
            out_ref[:, pl.ds(start, sub_tb)] = v.astype(out_ref.dtype)
            return carry

        if num_chunks == 1:
            chunk(0, 0)
        else:
            lax.fori_loop(0, num_chunks, chunk, 0, unroll=True)

    return kernel


def _round_up(x: int, m: int) -> int:
    return ((x + m - 1) // m) * m


def _vmem_limit_bytes(tb, obs_dim, params, obs_dtype):
    """Size VMEM from actual buffer math + margin (v7x per-TC VMEM is 64 MiB)."""
    itemsize = jnp.dtype(obs_dtype).itemsize
    obs_bytes = 2 * _round_up(tb, 8) * _round_up(obs_dim, 128) * itemsize   # 2 pipeline bufs
    out_bytes = 2 * 8 * _round_up(tb, 128) * 4
    param_bytes = 0
    for w, _ in params:
        param_bytes += _round_up(w.shape[0], 8) * _round_up(w.shape[1], 128) * 4
        param_bytes += _round_up(w.shape[0], 8) * 128 * 4
    param_bytes *= 2
    widths = [w.shape[0] for w, _ in params] + [obs_dim]
    interm = 4 * _round_up(max(widths), 8) * _round_up(tb, 128) * 4         # conservative
    need = obs_bytes + out_bytes + param_bytes + interm + (4 << 20)
    return int(min(max(need, 16 << 20), 56 << 20))


def custom_critic_forward(obs, params, *, tb_max: int = 8192, sub_tb: int = 512,
                          cast_obs_to_bf16: bool = False):
    """obs: (B, obs_dim); params: list of (W (out,in), b (out,)) PyTorch layout.

    Returns (B,) values, matching torch.squeeze(v_net(obs), -1).
    """
    num_layers = len(params)
    assert num_layers >= 1
    assert obs.ndim == 2
    w_last, b_last = params[-1]
    assert w_last.shape[0] == 1, "CustomCritic expects a single value output"
    assert tb_max % 128 == 0, "tb_max must be a multiple of 128 (TPU lane width)"

    B, obs_dim = obs.shape
    H = num_layers - 1

    obs_in = obs.astype(jnp.bfloat16) if cast_obs_to_bf16 else obs

    # Batch tiling: no wrapper-side transpose or pad.  A single full-extent
    # block for small B (no (8,128) constraint), otherwise lane-multiple tiles
    # with a ragged last block covered by the grid.
    tb = tb_max if B >= tb_max else B
    grid = (pl.cdiv(B, tb),)

    # Inner sub-chunking so activations stay vreg-resident across layers.
    if tb >= sub_tb and tb % sub_tb == 0:
        sub, num_chunks = sub_tb, tb // sub_tb
    else:
        sub, num_chunks = tb, 1

    kernel_args = [obs_in]
    in_specs = [pl.BlockSpec((tb, obs_dim), lambda i: (i, 0))]
    for w, b in params[:-1]:
        wb = b.reshape(-1, 1)                              # (out_j, 1)
        kernel_args += [w, wb]
        in_specs += [
            pl.BlockSpec(w.shape, lambda i: (0, 0)),       # VMEM-resident across grid
            pl.BlockSpec(wb.shape, lambda i: (0, 0)),
        ]
    if H >= 1:
        w_last_arg = w_last.reshape(-1, 1)                 # (hidden_last, 1) for VPU reduce
    else:
        w_last_arg = w_last                                # (1, obs_dim) for the NT matmul
    b_last_arg = b_last.reshape(1).astype(jnp.float32)     # (1,) scalar -> SMEM
    kernel_args += [w_last_arg, b_last_arg]
    in_specs += [
        pl.BlockSpec(w_last_arg.shape, lambda i: (0, 0)),
        pl.BlockSpec(memory_space=pltpu.MemorySpace.SMEM),
    ]

    out = pl.pallas_call(
        make_mlp_kernel(H, sub, num_chunks),
        grid=grid,
        in_specs=in_specs,
        out_specs=pl.BlockSpec((1, tb), lambda i: (0, i)),
        out_shape=jax.ShapeDtypeStruct((1, B), jnp.float32),
        compiler_params=pltpu.CompilerParams(
            dimension_semantics=("parallel",),             # megacore sharding of the batch axis
            vmem_limit_bytes=_vmem_limit_bytes(tb, obs_dim, params, obs_in.dtype),
        ),
    )(*kernel_args)

    # torch.squeeze(..., -1) -> (B,)
    return out[0]


def init_params(sizes, key):
    """Deterministic synthetic init, PyTorch-native layout: W (out, in), b (out,)."""
    params = []
    for j in range(len(sizes) - 1):
        key, kw, kb = jax.random.split(key, 3)
        bound = 1.0 / (sizes[j] ** 0.5)
        w = jax.random.uniform(kw, (sizes[j + 1], sizes[j]),
                               minval=-bound, maxval=bound, dtype=jnp.float32)
        b = jax.random.uniform(kb, (sizes[j + 1],),
                               minval=-bound, maxval=bound, dtype=jnp.float32)
        params.append((w, b))
    return params


def reference_forward(obs, params):
    """Plain-JAX reference (PyTorch Linear semantics: y = x @ W.T + b)."""
    x = obs
    n = len(params)
    for j, (w, b) in enumerate(params):
        x = jnp.dot(x, w.T, precision=jax.lax.Precision.HIGHEST) + b
        if j < n - 1:
            x = jnp.maximum(x, 0.0)
    return jnp.squeeze(x, axis=-1)


if __name__ == "__main__":
    key = jax.random.PRNGKey(0)
    key, kobs, kparams, kobs2, kobs3 = jax.random.split(key, 5)

    # Small critic: obs_dim=16, two hidden layers of 32, value head of size 1.
    sizes = [16, 32, 32, 1]
    params = init_params(sizes, kparams)

    # Case 1: small batch (single full-extent block, single sub-chunk).
    batch = 8
    obs = jax.random.normal(kobs, (batch, sizes[0]), dtype=jnp.float32)
    v = jax.block_until_ready(custom_critic_forward(obs, params))
    v_ref = reference_forward(obs, params)
    assert v.shape == (batch,), f"bad output shape {v.shape}"
    assert jnp.allclose(v, v_ref, atol=1e-5, rtol=1e-5), "mismatch (small batch)"

    # Case 2: gridded batch with a ragged last tile (no wrapper pad/transpose).
    batch2 = 300
    obs2 = jax.random.normal(kobs2, (batch2, sizes[0]), dtype=jnp.float32)
    v2 = jax.block_until_ready(custom_critic_forward(obs2, params, tb_max=128))
    v2_ref = reference_forward(obs2, params)
    assert v2.shape == (batch2,), f"bad output shape {v2.shape}"
    assert jnp.allclose(v2, v2_ref, atol=1e-5, rtol=1e-5), "mismatch (ragged grid)"

    # Case 3: multi-tile batch exercising the unrolled 512-lane sub-chunk loop.
    batch3 = 2048
    obs3 = jax.random.normal(kobs3, (batch3, sizes[0]), dtype=jnp.float32)
    v3 = jax.block_until_ready(custom_critic_forward(obs3, params, tb_max=1024))
    v3_ref = reference_forward(obs3, params)
    assert v3.shape == (batch3,), f"bad output shape {v3.shape}"
    assert jnp.allclose(v3, v3_ref, atol=1e-5, rtol=1e-5), "mismatch (sub-chunked)"

    # Case 4: bf16 obs stream (halves HBM obs traffic on v6e/v7x), f32 math.
    v4 = jax.block_until_ready(
        custom_critic_forward(obs3, params, tb_max=1024, cast_obs_to_bf16=True))
    assert v4.shape == (batch3,), f"bad output shape {v4.shape}"
    assert jnp.allclose(v4, v3_ref, atol=5e-2, rtol=5e-2), "mismatch (bf16 obs)"

    print("KERNEL_OK")
</pallas_src>

<mosaic_0001>
module attributes {stable_mosaic.version = 11 : i64} {
  func.func @kernel(%arg0: i32, %arg1: memref<8x16xf32, #tpu.memory_space<vmem>>, %arg2: memref<32x16xf32, #tpu.memory_space<vmem>>, %arg3: memref<32x1xf32, #tpu.memory_space<vmem>>, %arg4: memref<32x32xf32, #tpu.memory_space<vmem>>, %arg5: memref<32x1xf32, #tpu.memory_space<vmem>>, %arg6: memref<32x1xf32, #tpu.memory_space<vmem>>, %arg7: memref<1xf32, #tpu.memory_space<smem>>, %arg8: memref<1x8xf32, #tpu.memory_space<vmem>>) attributes {dimension_semantics = [#tpu.dimension_semantics<parallel>], iteration_bounds = array<i64: 1>, scalar_prefetch = 0 : i64, scratch_operands = 0 : i64, tpu.core_type = #tpu.core_type<tc>, window_params = [{transform_indices = @transform_0, window_bounds = array<i64: 8, 16>}, {pipeline_mode = #tpu.pipeline_mode<synchronous>, transform_indices = @transform_1, window_bounds = array<i64: 32, 16>}, {pipeline_mode = #tpu.pipeline_mode<synchronous>, transform_indices = @transform_2, window_bounds = array<i64: 32, 1>}, {pipeline_mode = #tpu.pipeline_mode<synchronous>, transform_indices = @transform_3, window_bounds = array<i64: 32, 32>}, {pipeline_mode = #tpu.pipeline_mode<synchronous>, transform_indices = @transform_4, window_bounds = array<i64: 32, 1>}, {pipeline_mode = #tpu.pipeline_mode<synchronous>, transform_indices = @transform_5, window_bounds = array<i64: 32, 1>}, {transform_indices = @transform_6, window_bounds = array<i64: 1>}, {transform_indices = @transform_7, window_bounds = array<i64: 1, 8>}]} {
    %c0 = arith.constant 0 : index
    %c0_0 = arith.constant 0 : index
    %0 = vector.load %arg2[%c0, %c0_0] : memref<32x16xf32, #tpu.memory_space<vmem>>, vector<32x16xf32>
    %c0_1 = arith.constant 0 : index
    %c0_2 = arith.constant 0 : index
    %1 = vector.load %arg4[%c0_1, %c0_2] : memref<32x32xf32, #tpu.memory_space<vmem>>, vector<32x32xf32>
    %c0_3 = arith.constant 0 : index
    %c0_4 = arith.constant 0 : index
    %2 = vector.load %arg3[%c0_3, %c0_4] : memref<32x1xf32, #tpu.memory_space<vmem>>, vector<32x1xf32>
    %c0_5 = arith.constant 0 : index
    %c0_6 = arith.constant 0 : index
    %3 = vector.load %arg5[%c0_5, %c0_6] : memref<32x1xf32, #tpu.memory_space<vmem>>, vector<32x1xf32>
    %c0_7 = arith.constant 0 : index
    %c0_8 = arith.constant 0 : index
    %4 = vector.load %arg6[%c0_7, %c0_8] : memref<32x1xf32, #tpu.memory_space<vmem>>, vector<32x1xf32>
    %c0_9 = arith.constant 0 : index
    %5 = memref.load %arg7[%c0_9] : memref<1xf32, #tpu.memory_space<smem>>
    %c0_10 = arith.constant 0 : index
    %c0_11 = arith.constant 0 : index
    %6 = vector.load %arg1[%c0_10, %c0_11] : memref<8x16xf32, #tpu.memory_space<vmem>>, vector<8x16xf32>
    %cst = arith.constant dense<0.000000e+00> : vector<32x8xf32>
    %7 = tpu.matmul %0, %6, %cst {dimension_numbers = #tpu.dot_dimension_numbers<[1], [1], [0], [0], [0, 0, 1, 0], [], []>} : vector<32x16xf32>, vector<8x16xf32>, vector<32x8xf32> -> vector<32x8xf32>
    %8 = vector.broadcast %2 : vector<32x1xf32> to vector<32x8xf32>
    %9 = arith.addf %7, %8 : vector<32x8xf32>
    %cst_12 = arith.constant 0.000000e+00 : f32
    %10 = vector.broadcast %cst_12 : f32 to vector<32x8xf32>
    %11 = arith.maximumf %9, %10 : vector<32x8xf32>
    %cst_13 = arith.constant dense<0.000000e+00> : vector<32x8xf32>
    %12 = tpu.matmul %1, %11, %cst_13 {dimension_numbers = #tpu.dot_dimension_numbers<[1], [0], [0], [1], [0, 0, 1, 1], [], []>} : vector<32x32xf32>, vector<32x8xf32>, vector<32x8xf32> -> vector<32x8xf32>
    %13 = vector.broadcast %3 : vector<32x1xf32> to vector<32x8xf32>
    %14 = arith.addf %12, %13 : vector<32x8xf32>
    %cst_14 = arith.constant 0.000000e+00 : f32
    %15 = vector.broadcast %cst_14 : f32 to vector<32x8xf32>
    %16 = arith.maximumf %14, %15 : vector<32x8xf32>
    %17 = vector.broadcast %4 : vector<32x1xf32> to vector<32x8xf32>
    %18 = arith.mulf %16, %17 : vector<32x8xf32>
    %cst_15 = arith.constant dense<0.000000e+00> : vector<8xf32>
    %19 = vector.multi_reduction <add>, %18, %cst_15 [0] : vector<32x8xf32> to vector<8xf32>
    %20 = vector.shape_cast %19 : vector<8xf32> to vector<1x8xf32>
    %21 = vector.broadcast %5 : f32 to vector<1x8xf32>
    %22 = arith.addf %20, %21 : vector<1x8xf32>
    %c0_16 = arith.constant 0 : index
    %c0_17 = arith.constant 0 : index
    %23 = vector.load %arg8[%c0_16, %c0_17] : memref<1x8xf32, #tpu.memory_space<vmem>>, vector<1x8xf32>
    tpu.vector_store %arg8[%c0_16, %c0_17], %22 {strides = array<i32>} : memref<1x8xf32, #tpu.memory_space<vmem>>, vector<1x8xf32>,
    return
  }
  func.func @transform_0(%arg0: i32) -> (i32, i32) {
    %c0_i32 = arith.constant 0 : i32
    %c0_i32_0 = arith.constant 0 : i32
    return %arg0, %c0_i32 : i32, i32
  }
  func.func @transform_1(%arg0: i32) -> (i32, i32) {
    %c0_i32 = arith.constant 0 : i32
    %c0_i32_0 = arith.constant 0 : i32
    %c0_i32_1 = arith.constant 0 : i32
    return %c0_i32, %c0_i32_0 : i32, i32
  }
  func.func @transform_2(%arg0: i32) -> (i32, i32) {
    %c0_i32 = arith.constant 0 : i32
    %c0_i32_0 = arith.constant 0 : i32
    %c0_i32_1 = arith.constant 0 : i32
    return %c0_i32, %c0_i32_0 : i32, i32
  }
  func.func @transform_3(%arg0: i32) -> (i32, i32) {
    %c0_i32 = arith.constant 0 : i32
    %c0_i32_0 = arith.constant 0 : i32
    %c0_i32_1 = arith.constant 0 : i32
    return %c0_i32, %c0_i32_0 : i32, i32
  }
  func.func @transform_4(%arg0: i32) -> (i32, i32) {
    %c0_i32 = arith.constant 0 : i32
    %c0_i32_0 = arith.constant 0 : i32
    %c0_i32_1 = arith.constant 0 : i32
    return %c0_i32, %c0_i32_0 : i32, i32
  }
  func.func @transform_5(%arg0: i32) -> (i32, i32) {
    %c0_i32 = arith.constant 0 : i32
    %c0_i32_0 = arith.constant 0 : i32
    %c0_i32_1 = arith.constant 0 : i32
    return %c0_i32, %c0_i32_0 : i32, i32
  }
  func.func @transform_6(%arg0: i32) -> i32 {
    %c0_i32 = arith.constant 0 : i32
    %c0_i32_0 = arith.constant 0 : i32
    return %c0_i32 : i32
  }
  func.func @transform_7(%arg0: i32) -> (i32, i32) {
    %c0_i32 = arith.constant 0 : i32
    %c0_i32_0 = arith.constant 0 : i32
    return %c0_i32, %arg0 : i32, i32
  }
}

</mosaic_0001>

<bundles_post_ra>
// kernel: tpu_custom_call.1
= control target key start
LH: loop header
LB: loop body
LE: loop exit
PB: predicated region body
PF: predicated region fallthrough
CT: control target
= control target key end

     0   :  { %vm70_vm0 = vcmask 130048   ;;  %v433_v4 = vmov 0   ;;  %s567_s0 = inlined_call_operand.vmem [shape: f32[8,16], index: 0, kind: input, shape index: {}]   ;;  %s568_s1 = inlined_call_operand.vmem [shape: f32[32,16], index: 1, kind: input, shape index: {}]   ;;  %s569_s2 = inlined_call_operand.vmem [shape: f32[32,1], index: 2, kind: input, shape index: {}]   ;;  %s570_s3 = inlined_call_operand.vmem [shape: f32[32,32], index: 3, kind: input, shape index: {}]   ;;  %s571_s4 = inlined_call_operand.vmem [shape: f32[32,1], index: 4, kind: input, shape index: {}]   ;;  %s572_s5 = inlined_call_operand.vmem [shape: f32[32,1], index: 5, kind: input, shape index: {}]   ;;  %s573_s6 = inlined_call_operand.<no memory space> [shape: f32[1], index: 6, kind: input, shape index: {}]   ;;  %s574_s7 = inlined_call_operand.hbm [shape: f32[1,8], index: 7, kind: output, shape index: {}]  }
   0x1   :  { %v49_v0 = vld [vmem:[%s567_s0] sm:$0xff]  ;;  %v29_v3 = vld [vmem:[%s568_s1 + $0x8] sm:$0xff]  ;;  %407 = vset.pattern.permute.xlu0 %v433_v4  ;;  %v38_v5 = vld [vmem:[%s569_s2 + $0x10] sm:$0xff]  ;;  %408 = vset.pattern.permute.xlu1 %v433_v4 }
   0x2   :  { %v28_v1 = vld [vmem:[%s568_s1] sm:$0xff]  ;;  %375 = vmatprep.subr.msk.mxu0 %vm70_vm0, %v49_v0  ;;  %v30_v6 = vld [vmem:[%s568_s1 + $0x10] sm:$0xff]  ;;  %62 = vperm.xlu1 %408, %v38_v5   ;;  %v37_v7 = vld [vmem:[%s569_s2 + $0x8] sm:$0xff] }
   0x3   :  { %377 = vmatprep.mubr.msk.f32.mxu0 %vm70_vm0, %v28_v1  ;;  %v36_v2 = vld [vmem:[%s569_s2] sm:$0xff]  ;;  %376 = vmatpush3.xpose.msk.msra.mxu0 %vm70_vm0, %v49_v0  ;;  %v39_v8 = vld [vmem:[%s569_s2 + $0x18] sm:$0xff] }
   0x4   :  { %52 = vperm.xlu0 %407, %v36_v2  }
   0x6   :  { %378 = vmatmul.mubr.msk.f32.vlgmr.msra.gmra.mrb[0].mxu0 %vm70_vm0, %v29_v3 }
   0x7   :  { %13 = vsyncpa [#allocation4], 0  ;;  %380 = vmatprep.mubr.msk.f32.mxu0 %vm70_vm0, %v30_v6  ;;  %v31_v9 = vld [vmem:[%s568_s1 + $0x18] sm:$0xff]  ;;  %67 = vperm.xlu1 %408, %v39_v8   ;;  %v40_v10 = vld [vmem:[%s571_s4] sm:$0xff]  ;;  %vm195_vm1 = vcmask 261120   ;;  %vm321_vm2 = vcmask 64512  }
   0x8   :  { %57 = vperm.xlu0 %407, %v37_v7   ;;  %v41_v11 = vld [vmem:[%s571_s4 + $0x8] sm:$0xff]  ;;  %v42_v12 = vld [vmem:[%s571_s4 + $0x10] sm:$0xff]  ;;  %v43_v13 = vld [vmem:[%s571_s4 + $0x18] sm:$0xff]  ;;  %s434_s15 = smov [#allocation3]   ;;  %vm337_vm3 = vcmask 57344  }
   0x9   :  { %v44_v14 = vld [vmem:[%s572_s5] sm:$0xff]  ;;  %v45_v15 = vld [vmem:[%s572_s5 + $0x8] sm:$0xff]  ;;  %v46_v16 = vld [vmem:[%s572_s5 + $0x10] sm:$0xff]  ;;  %s345_s16 = sshll.u32 %s434_s15, 4  ;;  %s346_s16 = int_to_ptr.vmem [resolvable:$true] %s345_s16 }
   0xa   :  { %381 = vmatmul.mubr.msk.f32.gmra.mrb[2].mxu0 %vm70_vm0, %v31_v9  ;;  %v47_v17 = vld [vmem:[%s572_s5 + $0x18] sm:$0xff]  ;;  %v32_v18 = vld [vmem:[%s570_s3] sm:$0xff]  ;;  %v33_v37 = vld [vmem:[%s570_s3 + $0x8] sm:$0xff]  ;;  %s409_s17 = scalar_lea.vmem %s346_s16, 16  ;;  %s413_s18 = scalar_lea.vmem %s346_s16, 32 }
   0xb   :  { %182 = vperm.xlu1 %408, %v41_v11   ;;  %391 = vmatprep.mubr.msk.f32.mxu1 %vm195_vm1, %v32_v18  ;;  %v34_v38 = vld [vmem:[%s570_s3 + $0x10] sm:$0xff]  ;;  %v35_v39 = vld [vmem:[%s570_s3 + $0x18] sm:$0xff]  ;;  %p410_p0 = scmp.ne.s32.totalorder %s346_s16, %s409_s17  ;;  %p414_p1 = scmp.lt.s32.totalorder %s346_s16, %s346_s16 }
   0xc   :  { %177 = vperm.xlu0 %407, %v40_v10   ;;  %p415_p2 = scmp.lt.s32.totalorder %s413_s18, %s409_s17 }
   0xe   :  { %p416_p3 = por %p415_p2, %p414_p1 }
   0xf   :  { %192 = vperm.xlu1 %408, %v43_v13  }
  0x10   :  { %187 = vperm.xlu0 %407, %v42_v12   ;;  %v335_v12 = vstv %s573_s6  ;;  %p417_p4 = pnand %p416_p3, %p410_p0 }
  0x13   :  { %304 = vperm.xlu1 %408, %v45_v15  }
  0x14   :  { %299 = vperm.xlu0 %407, %v44_v14  }
  0x17   :  { %314 = vperm.xlu1 %408, %v47_v17  }
  0x18   :  { %309 = vperm.xlu0 %407, %v46_v16  }
  0x81   :  { %v63_v20 = vpop.permute.xlu1 %62 }
  0x83   :  { %v53_v19 = vpop.permute.xlu0 %52 }
  0x86   :  { %v68_v27 = vpop.permute.xlu1 %67 }
  0x87   :  { %v58_v21 = vpop.permute.xlu0 %57 }
  0x8a   :  { %v183_v41 = vpop.permute.xlu1 %182 }
  0x8b   :  { %v178_v40 = vpop.permute.xlu0 %177 }
  0x8e   :  { %v193_v43 = vpop.permute.xlu1 %192 }
  0x8f   :  { %v188_v42 = vpop.permute.xlu0 %187 }
  0x92   :  { %v305_v49 = vpop.permute.xlu1 %304 }
  0x93   :  { %v300_v48 = vpop.permute.xlu0 %299 }
  0x96   :  { %v315_v63 = vpop.permute.xlu1 %314 }
  0x97   :  { %v310_v62 = vpop.permute.xlu0 %309 }
  0xd9   :  { %v379_v22 = vpop.f32.mrb[0].mxu0 }
  0xda   :  { %v158_v23 = vadd.f32 %v379_v22, %v58_v21  ;;  %v152_v24 = vpop.f32.mrb[1].mxu0 }
  0xdb   :  { %v153_v25 = vadd.f32 %v152_v24, %v53_v19 }
  0xdc   :  { %v172_v26 = vmax.f32 %v158_v23, 0.0 }
  0xdd   :  { %v171_v28 = vmax.f32 %v153_v25, 0.0  ;;  %v382_v29 = vpop.f32.mrb[2].mxu0 }
  0xde   :  { %v168_v30 = vadd.f32 %v382_v29, %v68_v27  ;;  %v162_v31 = vpop.f32.mrb[3].mxu0 }
  0xdf   :  { %v163_v32 = vadd.f32 %v162_v31, %v63_v20  ;;  %v397_v33 = vpack.c.bf16 %v172_v26, %v171_v28 }
  0xe0   :  { %v174_v34 = vmax.f32 %v168_v30, 0.0 }
  0xe1   :  { %v173_v35 = vmax.f32 %v163_v32, 0.0  ;;  %398 = vmatprep.subr.bf16.mxu1 %v397_v33 }
  0xe2   :  { %400 = vmatpush3.bf16.msra.mxu1 %v397_v33 }
  0xe3   :  { %v401_v36 = vpack.c.bf16 %v174_v34, %v173_v35 }
  0xe5   :  { %402 = vmatprep.subr.bf16.mxu1 %v401_v36 }
  0xe6   :  { %404 = vmatpush3.bf16.msra.mxu1 %v401_v36 }
  0xe9   :  { %392 = vmatmul.mubr.msk.f32.vlgmr.msra.gmra.mrb[0].mxu1 %vm195_vm1, %v33_v37 }
  0xea   :  { %394 = vmatprep.mubr.msk.f32.mxu1 %vm195_vm1, %v34_v38 }
  0xed   :  { %395 = vmatmul.mubr.msk.f32.gmra.mrb[2].mxu1 %vm195_vm1, %v35_v39 }
 0x1bc   :  { %v393_v44 = vpop.f32.mrb[0].mxu1 }
 0x1bd   :  { %v280_v45 = vadd.f32 %v393_v44, %v183_v41  ;;  %v274_v46 = vpop.f32.mrb[1].mxu1 }
 0x1be   :  { %v275_v47 = vadd.f32 %v274_v46, %v178_v40 }
 0x1bf   :  { %v294_v50 = vmax.f32 %v280_v45, 0.0 }
 0x1c0   :  { %v293_v51 = vmax.f32 %v275_v47, 0.0  ;;  %v396_v52 = vpop.f32.mrb[2].mxu1 }
 0x1c1   :  { %v318_v53 = vmul.f32 %v305_v49, %v294_v50  ;;  %v290_v54 = vadd.f32 %v396_v52, %v193_v43  ;;  %v284_v55 = vpop.f32.mrb[3].mxu1 }
 0x1c2   :  { %v317_v56 = vmul.f32 %v300_v48, %v293_v51  ;;  %v285_v57 = vadd.f32 %v284_v55, %v188_v42 }
 0x1c3   :  { %v323_v58 = vsel %vm321_vm2, %v318_v53, 0.0  ;;  %v296_v59 = vmax.f32 %v290_v54, 0.0 }
 0x1c4   :  { %v322_v60 = vsel %vm321_vm2, %v317_v56, 0.0  ;;  %v295_v61 = vmax.f32 %v285_v57, 0.0 }
 0x1c5   :  { %v324_v0 = vadd.f32 %v323_v58, %v322_v60  ;;  %v320_v1 = vmul.f32 %v315_v63, %v296_v59 }
 0x1c6   :  { %v319_v2 = vmul.f32 %v310_v62, %v295_v61 }
 0x1c7   :  { %v327_v5 = vsel %vm321_vm2, %v320_v1, 0.0 }
 0x1c8   :  { %v325_v3 = vsel %vm321_vm2, %v319_v2, 0.0 }
 0x1c9   :  { %v326_v4 = vadd.f32 %v325_v3, %v324_v0 }
 0x1cb   :  { %v328_v6 = vadd.f32 %v327_v5, %v326_v4 }
 0x1cd   :  { %v329_v7 = vrot.slane %v328_v6, 4 }
 0x1cf   :  { %v330_v8 = vadd.f32 %v329_v7, %v328_v6 }
 0x1d1   :  { %v331_v9 = vrot.slane %v330_v8, 2 }
 0x1d3   :  { %v332_v10 = vadd.f32 %v331_v9, %v330_v8 }
 0x1d5   :  { %v333_v11 = vrot.slane %v332_v10, 1 }
 0x1d7   :  { %v334_v13 = vadd.f32 %v333_v11, %v332_v10 }
 0x1d9   :  { %v336_v14 = vadd.f32 %v335_v12, %v334_v13 }
 0x1db   :  { %338 = vst.msk [vmem:[#allocation3] sm:$0x1] %vm337_vm3, %v336_v14 }
 0x1dc   :  { %420 = shalt.err (!%p417_p4)
}
 0x1dd   :  { %s421_s21 = scalar_lea.hbm %s574_s7, 16 }
 0x1de   :  { %p422_p5 = scmp.ne.s32.totalorder %s574_s7, %s421_s21  ;;  %p425_p6 = scmp.lt.u32.totalorder %s421_s21, %s574_s7 }
 0x1e0   :  { %p427_p7 = pnand %p425_p6, %p422_p5 }
 0x1e2   :  { %430 = shalt.err (!%p427_p7)
}
 0x1e3   :  { %348 = dma.vmem_to_hbm [thread:$0]  %s346_s16, 16, %s574_s7, [#allocation4]  }
 0x1e4   :  { %431 = dma.done.wait [#allocation4], 16  }
 0x1e5   :  { %432 = vsyncadd [#allocation4], 4294967280 }
 0x1e6   :  { %352 = vsyncpa [#allocation4], 1 }

</bundles_post_ra>
